<compile_context>
chip_gen: v7x
topology: tpu7x:2x2x1
jax: 0.10.0
libtpu: 0.0.40
codegen_flags: <defaults>
</compile_context>

<pallas_src>
import functools

import jax
import jax.numpy as jnp
from jax import lax
from jax.experimental import pallas as pl
from jax.experimental.pallas import tpu as pltpu

LANE = 128
# Per-grid-step VMEM working-set budget: fits v7x's 64 MiB physical VMEM with
# headroom for Mosaic internal scratch; conservative on v5e/v6e (128 MiB).
VMEM_BUDGET_BYTES = 40 * 1024 * 1024
VMEM_LIMIT_BYTES = 48 * 1024 * 1024
# Measured fraction of the HBM roofline reached by a streamed row tile of this
# many rows (tiled mem-bound Pallas measurements, v6e).
_TILE_EFFICIENCY = {128: 0.45, 256: 0.63, 512: 0.85, 1024: 0.86}


def _round_up(x, m):
    return (x + m - 1) // m * m


def _vmem_per_step(tile_n, n_pad, hp, cp):
    """Worst-case (kernel 2) per-step VMEM bytes with default double-buffering."""
    return (2 * tile_n * n_pad * 2        # streamed A row tile (bf16, x2 buffers)
            + 2 * n_pad * hp * 2          # resident H (bf16, x2 buffers)
            + 2 * hp * cp * 2             # resident W2
            + 2 * cp * 4                  # resident b2
            + 2 * tile_n * cp * 2         # output tile (bf16/f32 worst, x2)
            + 2 * tile_n * hp * 4)        # f32 matmul intermediates


def choose_tiling(n, hp, cp):
    """Pick (tile_n, n_pad): biggest tile that fits the VMEM budget, scored by
    streamed-A bytes (incl. padding waste) divided by measured tile efficiency."""
    n128 = max(_round_up(n, LANE), LANE)
    best = None
    for t in (1024, 512, 256, 128):
        n_pad = _round_up(n128, t)
        if _vmem_per_step(t, n_pad, hp, cp) > VMEM_BUDGET_BYTES:
            continue
        score = (n_pad * n_pad) / _TILE_EFFICIENCY[t]
        if best is None or score < best[0]:
            best = (score, t, n_pad)
    if best is None:
        # TODO(synk): for N this large, K-tile the A@H / A@Z matmuls (grid
        # contraction axis + f32 accumulator scratch + pl.when init/finalize)
        # instead of holding a full (tile_n, n_pad) A slab and all of H/Z.
        t = 128
        return t, _round_up(n128, t)
    return best[1], best[2]


# ---------------------------------------------------------------------------
# Kernels (all row-tiled over the node dimension).
# ---------------------------------------------------------------------------
def linear_kernel(x_ref, w_ref, b_ref, o_ref):
    """o = X_tile @ W1 + b1   (layer-1 feature transform, lane-padded)."""
    acc = jnp.dot(x_ref[...], w_ref[...], preferred_element_type=jnp.float32)
    o_ref[...] = (acc + b_ref[...]).astype(o_ref.dtype)


def prop_relu_linear_kernel(a_ref, h_ref, w_ref, b_ref, o_ref):
    """o = relu(A_tile @ H) @ W2 + b2  (layer-1 propagate + ReLU + layer-2 lin)."""
    agg = jnp.dot(a_ref[...], h_ref[...], preferred_element_type=jnp.float32)
    agg = jnp.maximum(agg, 0.0)
    # TODO(synk): F.dropout(training=True) not implemented; identity == eval mode.
    acc = jnp.dot(agg.astype(w_ref.dtype), w_ref[...],
                  preferred_element_type=jnp.float32)
    o_ref[...] = (acc + b_ref[...]).astype(o_ref.dtype)


def prop_logsoftmax_kernel(a_ref, z_ref, o_ref, *, n_valid_cols):
    """o = log_softmax(A_tile @ Z, axis=1), padded class columns masked."""
    z = jnp.dot(a_ref[...], z_ref[...], preferred_element_type=jnp.float32)
    col = lax.broadcasted_iota(jnp.int32, z.shape, 1)
    z = jnp.where(col < n_valid_cols, z, -1e30)       # mask lane padding
    m = jnp.max(z, axis=1, keepdims=True)
    e = jnp.exp(z - m)
    s = jnp.sum(e, axis=1, keepdims=True)
    o_ref[...] = (z - m - jnp.log(s)).astype(o_ref.dtype)


# ---------------------------------------------------------------------------
# One-time setup: add_self_loops + symmetric GCN norm -> dense, padded, bf16.
# ---------------------------------------------------------------------------
def build_norm_adj(edge_index, num_nodes):
    """A_norm[target, source] = deg^-1/2[row] * deg^-1/2[col]; propagate == A @ x."""
    row, col = edge_index[0], edge_index[1]
    loop = jnp.arange(num_nodes, dtype=edge_index.dtype)
    row = jnp.concatenate([row, loop])
    col = jnp.concatenate([col, loop])

    deg = jnp.zeros((num_nodes,), jnp.float32).at[row].add(1.0)
    deg_inv_sqrt = deg ** -0.5
    norm = deg_inv_sqrt[row] * deg_inv_sqrt[col]

    # TODO(synk): dense O(N^2) adjacency; genuinely sparse graphs (Cora density
    # ~1.4e-3) should use a CSR scalar-prefetch gather kernel instead.
    a = jnp.zeros((num_nodes, num_nodes), jnp.float32).at[col, row].add(norm)
    return a


def prepare_gcn_inputs(x, edge_index, w1, b1, w2, b2):
    """One-time pad + bf16 cast of every operand, hoisted out of the forward."""
    n, f0 = x.shape
    hidden = w1.shape[1]
    n_cls = w2.shape[1]
    hp = _round_up(hidden, LANE)              # hidden padded to 128 lanes
    cp = _round_up(n_cls, LANE)               # classes padded to 128 lanes
    f0p = _round_up(f0, LANE)                 # input features padded to 128 lanes
    tile_n, n_pad = choose_tiling(n, hp, cp)

    a_norm = build_norm_adj(edge_index, n)
    # TODO(synk): generation-specific low-precision A (fp8 on v7x, int8 on
    # v5e/v6e) would halve the dominant HBM stream again; kept bf16 here.
    a_p = jnp.pad(a_norm, ((0, n_pad - n), (0, n_pad - n))).astype(jnp.bfloat16)
    x_p = jnp.pad(x, ((0, n_pad - n), (0, f0p - f0))).astype(jnp.bfloat16)
    w1_p = jnp.pad(w1, ((0, f0p - f0), (0, hp - hidden))).astype(jnp.bfloat16)
    b1_p = jnp.pad(b1, ((0, 0), (0, hp - hidden))).astype(jnp.float32)
    w2_p = jnp.pad(w2, ((0, hp - hidden), (0, cp - n_cls))).astype(jnp.bfloat16)
    b2_p = jnp.pad(b2, ((0, 0), (0, cp - n_cls))).astype(jnp.float32)

    arrays = (x_p, a_p, w1_p, b1_p, w2_p, b2_p)
    static = dict(tile_n=tile_n, n=n, n_cls=n_cls)
    return arrays, static


# ---------------------------------------------------------------------------
# Forward: three row-tiled pallas_calls over already-padded bf16 operands.
# ---------------------------------------------------------------------------
@functools.partial(jax.jit, static_argnames=("tile_n", "n", "n_cls"))
def gcn_forward(x_p, a_p, w1_p, b1_p, w2_p, b2_p, *, tile_n, n, n_cls):
    n_pad, f0p = x_p.shape
    hp = w1_p.shape[1]
    cp = w2_p.shape[1]
    grid = (n_pad // tile_n,)

    params = pltpu.CompilerParams(
        dimension_semantics=("parallel",),    # independent row tiles (megacore)
        vmem_limit_bytes=VMEM_LIMIT_BYTES,
    )

    # ---- layer-1 feature transform: H = X @ W1 + b1  (row-tiled) ----
    h_lin = pl.pallas_call(
        linear_kernel,
        out_shape=jax.ShapeDtypeStruct((n_pad, hp), jnp.bfloat16),
        grid=grid,
        in_specs=[
            pl.BlockSpec((tile_n, f0p), lambda i: (i, 0)),
            pl.BlockSpec((f0p, hp), lambda i: (0, 0)),
            pl.BlockSpec((1, hp), lambda i: (0, 0)),
        ],
        out_specs=pl.BlockSpec((tile_n, hp), lambda i: (i, 0)),
        compiler_params=params,
    )(x_p, w1_p, b1_p)

    # ---- layer-1 propagate + ReLU + layer-2 transform (A rows streamed) ----
    z_lin = pl.pallas_call(
        prop_relu_linear_kernel,
        out_shape=jax.ShapeDtypeStruct((n_pad, cp), jnp.bfloat16),
        grid=grid,
        in_specs=[
            pl.BlockSpec((tile_n, n_pad), lambda i: (i, 0)),   # streamed A rows
            pl.BlockSpec((n_pad, hp), lambda i: (0, 0)),       # H resident
            pl.BlockSpec((hp, cp), lambda i: (0, 0)),          # W2 resident
            pl.BlockSpec((1, cp), lambda i: (0, 0)),           # b2 resident
        ],
        out_specs=pl.BlockSpec((tile_n, cp), lambda i: (i, 0)),
        compiler_params=params,
    )(a_p, h_lin, w2_p, b2_p)

    # ---- layer-2 propagate + masked log_softmax (A rows streamed) ----
    out_p = pl.pallas_call(
        functools.partial(prop_logsoftmax_kernel, n_valid_cols=n_cls),
        out_shape=jax.ShapeDtypeStruct((n_pad, cp), jnp.float32),
        grid=grid,
        in_specs=[
            pl.BlockSpec((tile_n, n_pad), lambda i: (i, 0)),   # streamed A rows
            pl.BlockSpec((n_pad, cp), lambda i: (0, 0)),       # Z resident
        ],
        out_specs=pl.BlockSpec((tile_n, cp), lambda i: (i, 0)),
        compiler_params=params,
    )(a_p, z_lin)

    # Rows >= n and class columns >= n_cls are padding garbage; slice them off.
    return out_p[:n, :n_cls]


# ---------------------------------------------------------------------------
# Pure-JAX reference + deterministic init + smoke test.
# ---------------------------------------------------------------------------
def gcn_reference(x, a, w1, b1, w2, b2):
    h = jnp.maximum(a @ (x @ w1 + b1), 0.0)
    z = a @ (h @ w2 + b2)
    return jax.nn.log_softmax(z, axis=1)


def init_linear(key, fan_in, fan_out):
    """torch.nn.Linear-style init: U(-1/sqrt(fan_in), 1/sqrt(fan_in))."""
    kw, kb = jax.random.split(key)
    bound = 1.0 / (fan_in ** 0.5)
    w = jax.random.uniform(kw, (fan_in, fan_out), jnp.float32, -bound, bound)
    b = jax.random.uniform(kb, (1, fan_out), jnp.float32, -bound, bound)
    return w, b


if __name__ == "__main__":
    key = jax.random.PRNGKey(0)
    k_x, k_w1, k_w2 = jax.random.split(key, 3)

    # Small synthetic "Cora-like" graph.
    num_nodes = 32
    num_node_features = 16
    hidden = 16
    num_classes = 8

    x = jax.random.normal(k_x, (num_nodes, num_node_features), jnp.float32)

    # Deterministic bidirectional ring graph, edge_index = (2, E).
    src = jnp.arange(num_nodes, dtype=jnp.int32)
    dst = (src + 1) % num_nodes
    edge_index = jnp.stack(
        [jnp.concatenate([src, dst]), jnp.concatenate([dst, src])], axis=0
    )

    w1, b1 = init_linear(k_w1, num_node_features, hidden)
    w2, b2 = init_linear(k_w2, hidden, num_classes)

    # One-time prepare (pad + bf16 cast of A / X / weights), hoisted out of the
    # jitted forward so repeated calls only stream the padded bf16 arrays.
    arrays, static = prepare_gcn_inputs(x, edge_index, w1, b1, w2, b2)
    arrays = jax.block_until_ready(arrays)

    out = gcn_forward(*arrays, **static)
    jax.block_until_ready(out)

    assert out.shape == (num_nodes, num_classes)
    # log_softmax rows must exp-sum to 1.
    assert jnp.allclose(jnp.sum(jnp.exp(out), axis=1), 1.0, atol=1e-3)
    # bf16-tolerant check against a pure-JAX f32 reference.
    a_norm = build_norm_adj(edge_index, num_nodes)
    ref = gcn_reference(x, a_norm, w1, b1, w2, b2)
    assert jnp.allclose(out, ref, atol=0.1, rtol=0.1), float(
        jnp.max(jnp.abs(out - ref))
    )

    print("KERNEL_OK")
</pallas_src>

<mosaic_0001>
module attributes {stable_mosaic.version = 11 : i64} {
  func.func @linear_kernel(%arg0: i32, %arg1: memref<128x128xbf16, #tpu.memory_space<vmem>>, %arg2: memref<128x128xbf16, #tpu.memory_space<vmem>>, %arg3: memref<1x128xf32, #tpu.memory_space<vmem>>, %arg4: memref<128x128xbf16, #tpu.memory_space<vmem>>) attributes {dimension_semantics = [#tpu.dimension_semantics<parallel>], iteration_bounds = array<i64: 1>, scalar_prefetch = 0 : i64, scratch_operands = 0 : i64, tpu.core_type = #tpu.core_type<tc>, window_params = [{transform_indices = @transform_0, window_bounds = array<i64: 128, 128>}, {pipeline_mode = #tpu.pipeline_mode<synchronous>, transform_indices = @transform_1, window_bounds = array<i64: 128, 128>}, {pipeline_mode = #tpu.pipeline_mode<synchronous>, transform_indices = @transform_2, window_bounds = array<i64: 1, 128>}, {transform_indices = @transform_3, window_bounds = array<i64: 128, 128>}]} {
    %c0 = arith.constant 0 : index
    %c0_0 = arith.constant 0 : index
    %0 = vector.load %arg1[%c0, %c0_0] : memref<128x128xbf16, #tpu.memory_space<vmem>>, vector<128x128xbf16>
    %c0_1 = arith.constant 0 : index
    %c0_2 = arith.constant 0 : index
    %1 = vector.load %arg2[%c0_1, %c0_2] : memref<128x128xbf16, #tpu.memory_space<vmem>>, vector<128x128xbf16>
    %cst = arith.constant dense<0.000000e+00> : vector<128x128xf32>
    %2 = tpu.matmul %0, %1, %cst {dimension_numbers = #tpu.dot_dimension_numbers<[1], [0], [0], [1], [0, 0, 1, 1], [], []>} : vector<128x128xbf16>, vector<128x128xbf16>, vector<128x128xf32> -> vector<128x128xf32>
    %c0_3 = arith.constant 0 : index
    %c0_4 = arith.constant 0 : index
    %3 = vector.load %arg3[%c0_3, %c0_4] : memref<1x128xf32, #tpu.memory_space<vmem>>, vector<1x128xf32>
    %4 = vector.broadcast %3 : vector<1x128xf32> to vector<128x128xf32>
    %5 = arith.addf %2, %4 : vector<128x128xf32>
    %6 = arith.truncf %5 : vector<128x128xf32> to vector<128x128xbf16>
    %c0_5 = arith.constant 0 : index
    %c0_6 = arith.constant 0 : index
    %7 = vector.load %arg4[%c0_5, %c0_6] : memref<128x128xbf16, #tpu.memory_space<vmem>>, vector<128x128xbf16>
    tpu.vector_store %arg4[%c0_5, %c0_6], %6 {strides = array<i32>} : memref<128x128xbf16, #tpu.memory_space<vmem>>, vector<128x128xbf16>,
    return
  }
  func.func @transform_0(%arg0: i32) -> (i32, i32) {
    %c0_i32 = arith.constant 0 : i32
    %c0_i32_0 = arith.constant 0 : i32
    return %arg0, %c0_i32 : i32, i32
  }
  func.func @transform_1(%arg0: i32) -> (i32, i32) {
    %c0_i32 = arith.constant 0 : i32
    %c0_i32_0 = arith.constant 0 : i32
    %c0_i32_1 = arith.constant 0 : i32
    return %c0_i32, %c0_i32_0 : i32, i32
  }
  func.func @transform_2(%arg0: i32) -> (i32, i32) {
    %c0_i32 = arith.constant 0 : i32
    %c0_i32_0 = arith.constant 0 : i32
    %c0_i32_1 = arith.constant 0 : i32
    return %c0_i32, %c0_i32_0 : i32, i32
  }
  func.func @transform_3(%arg0: i32) -> (i32, i32) {
    %c0_i32 = arith.constant 0 : i32
    %c0_i32_0 = arith.constant 0 : i32
    return %arg0, %c0_i32 : i32, i32
  }
}

module attributes {stable_mosaic.version = 11 : i64} {
  func.func @prop_relu_linear_kernel(%arg0: i32, %arg1: memref<128x128xbf16, #tpu.memory_space<vmem>>, %arg2: memref<128x128xbf16, #tpu.memory_space<vmem>>, %arg3: memref<128x128xbf16, #tpu.memory_space<vmem>>, %arg4: memref<1x128xf32, #tpu.memory_space<vmem>>, %arg5: memref<128x128xbf16, #tpu.memory_space<vmem>>) attributes {dimension_semantics = [#tpu.dimension_semantics<parallel>], iteration_bounds = array<i64: 1>, scalar_prefetch = 0 : i64, scratch_operands = 0 : i64, tpu.core_type = #tpu.core_type<tc>, window_params = [{transform_indices = @transform_0, window_bounds = array<i64: 128, 128>}, {pipeline_mode = #tpu.pipeline_mode<synchronous>, transform_indices = @transform_1, window_bounds = array<i64: 128, 128>}, {pipeline_mode = #tpu.pipeline_mode<synchronous>, transform_indices = @transform_2, window_bounds = array<i64: 128, 128>}, {pipeline_mode = #tpu.pipeline_mode<synchronous>, transform_indices = @transform_3, window_bounds = array<i64: 1, 128>}, {transform_indices = @transform_4, window_bounds = array<i64: 128, 128>}]} {
    %c0 = arith.constant 0 : index
    %c0_0 = arith.constant 0 : index
    %0 = vector.load %arg1[%c0, %c0_0] : memref<128x128xbf16, #tpu.memory_space<vmem>>, vector<128x128xbf16>
    %c0_1 = arith.constant 0 : index
    %c0_2 = arith.constant 0 : index
    %1 = vector.load %arg2[%c0_1, %c0_2] : memref<128x128xbf16, #tpu.memory_space<vmem>>, vector<128x128xbf16>
    %cst = arith.constant dense<0.000000e+00> : vector<128x128xf32>
    %2 = tpu.matmul %0, %1, %cst {dimension_numbers = #tpu.dot_dimension_numbers<[1], [0], [0], [1], [0, 0, 1, 1], [], []>} : vector<128x128xbf16>, vector<128x128xbf16>, vector<128x128xf32> -> vector<128x128xf32>
    %cst_3 = arith.constant 0.000000e+00 : f32
    %3 = vector.broadcast %cst_3 : f32 to vector<128x128xf32>
    %4 = arith.maximumf %2, %3 : vector<128x128xf32>
    %5 = arith.truncf %4 : vector<128x128xf32> to vector<128x128xbf16>
    %c0_4 = arith.constant 0 : index
    %c0_5 = arith.constant 0 : index
    %6 = vector.load %arg3[%c0_4, %c0_5] : memref<128x128xbf16, #tpu.memory_space<vmem>>, vector<128x128xbf16>
    %cst_6 = arith.constant dense<0.000000e+00> : vector<128x128xf32>
    %7 = tpu.matmul %5, %6, %cst_6 {dimension_numbers = #tpu.dot_dimension_numbers<[1], [0], [0], [1], [0, 0, 1, 1], [], []>} : vector<128x128xbf16>, vector<128x128xbf16>, vector<128x128xf32> -> vector<128x128xf32>
    %c0_7 = arith.constant 0 : index
    %c0_8 = arith.constant 0 : index
    %8 = vector.load %arg4[%c0_7, %c0_8] : memref<1x128xf32, #tpu.memory_space<vmem>>, vector<1x128xf32>
    %9 = vector.broadcast %8 : vector<1x128xf32> to vector<128x128xf32>
    %10 = arith.addf %7, %9 : vector<128x128xf32>
    %11 = arith.truncf %10 : vector<128x128xf32> to vector<128x128xbf16>
    %c0_9 = arith.constant 0 : index
    %c0_10 = arith.constant 0 : index
    %12 = vector.load %arg5[%c0_9, %c0_10] : memref<128x128xbf16, #tpu.memory_space<vmem>>, vector<128x128xbf16>
    tpu.vector_store %arg5[%c0_9, %c0_10], %11 {strides = array<i32>} : memref<128x128xbf16, #tpu.memory_space<vmem>>, vector<128x128xbf16>,
    return
  }
  func.func @transform_0(%arg0: i32) -> (i32, i32) {
    %c0_i32 = arith.constant 0 : i32
    %c0_i32_0 = arith.constant 0 : i32
    return %arg0, %c0_i32 : i32, i32
  }
  func.func @transform_1(%arg0: i32) -> (i32, i32) {
    %c0_i32 = arith.constant 0 : i32
    %c0_i32_0 = arith.constant 0 : i32
    %c0_i32_1 = arith.constant 0 : i32
    return %c0_i32, %c0_i32_0 : i32, i32
  }
  func.func @transform_2(%arg0: i32) -> (i32, i32) {
    %c0_i32 = arith.constant 0 : i32
    %c0_i32_0 = arith.constant 0 : i32
    %c0_i32_1 = arith.constant 0 : i32
    return %c0_i32, %c0_i32_0 : i32, i32
  }
  func.func @transform_3(%arg0: i32) -> (i32, i32) {
    %c0_i32 = arith.constant 0 : i32
    %c0_i32_0 = arith.constant 0 : i32
    %c0_i32_1 = arith.constant 0 : i32
    return %c0_i32, %c0_i32_0 : i32, i32
  }
  func.func @transform_4(%arg0: i32) -> (i32, i32) {
    %c0_i32 = arith.constant 0 : i32
    %c0_i32_0 = arith.constant 0 : i32
    return %arg0, %c0_i32 : i32, i32
  }
}

module attributes {stable_mosaic.version = 11 : i64} {
  func.func @prop_logsoftmax_kernel(%arg0: i32, %arg1: memref<128x128xbf16, #tpu.memory_space<vmem>>, %arg2: memref<128x128xbf16, #tpu.memory_space<vmem>>, %arg3: memref<128x128xf32, #tpu.memory_space<vmem>>) attributes {dimension_semantics = [#tpu.dimension_semantics<parallel>], iteration_bounds = array<i64: 1>, scalar_prefetch = 0 : i64, scratch_operands = 0 : i64, tpu.core_type = #tpu.core_type<tc>, window_params = [{transform_indices = @transform_0, window_bounds = array<i64: 128, 128>}, {pipeline_mode = #tpu.pipeline_mode<synchronous>, transform_indices = @transform_1, window_bounds = array<i64: 128, 128>}, {transform_indices = @transform_2, window_bounds = array<i64: 128, 128>}]} {
    %c0 = arith.constant 0 : index
    %c0_0 = arith.constant 0 : index
    %0 = vector.load %arg1[%c0, %c0_0] : memref<128x128xbf16, #tpu.memory_space<vmem>>, vector<128x128xbf16>
    %c0_1 = arith.constant 0 : index
    %c0_2 = arith.constant 0 : index
    %1 = vector.load %arg2[%c0_1, %c0_2] : memref<128x128xbf16, #tpu.memory_space<vmem>>, vector<128x128xbf16>
    %cst = arith.constant dense<0.000000e+00> : vector<128x128xf32>
    %2 = tpu.matmul %0, %1, %cst {dimension_numbers = #tpu.dot_dimension_numbers<[1], [0], [0], [1], [0, 0, 1, 1], [], []>} : vector<128x128xbf16>, vector<128x128xbf16>, vector<128x128xf32> -> vector<128x128xf32>
    %3 = tpu.iota {dimensions = array<i32: 1>} : vector<128x128xi32>
    %c8_i32 = arith.constant 8 : i32
    %4 = vector.broadcast %c8_i32 : i32 to vector<128x128xi32>
    %5 = arith.cmpi slt, %3, %4 : vector<128x128xi32>
    %cst_3 = arith.constant -1.000000e+30 : f32
    %6 = vector.broadcast %cst_3 : f32 to vector<128x128xf32>
    %7 = arith.select %5, %2, %6 : vector<128x128xi1>, vector<128x128xf32>
    %cst_4 = arith.constant dense<0xFF800000> : vector<128xf32>
    %8 = vector.multi_reduction <maximumf>, %7, %cst_4 [1] : vector<128x128xf32> to vector<128xf32>
    %9 = vector.shape_cast %8 : vector<128xf32> to vector<128x1xf32>
    %10 = vector.broadcast %9 : vector<128x1xf32> to vector<128x128xf32>
    %11 = arith.subf %7, %10 : vector<128x128xf32>
    %12 = math.exp %11 : vector<128x128xf32>
    %cst_5 = arith.constant dense<0.000000e+00> : vector<128xf32>
    %13 = vector.multi_reduction <add>, %12, %cst_5 [1] : vector<128x128xf32> to vector<128xf32>
    %14 = vector.shape_cast %13 : vector<128xf32> to vector<128x1xf32>
    %15 = vector.broadcast %9 : vector<128x1xf32> to vector<128x128xf32>
    %16 = arith.subf %7, %15 : vector<128x128xf32>
    %17 = math.log %14 : vector<128x1xf32>
    %18 = vector.broadcast %17 : vector<128x1xf32> to vector<128x128xf32>
    %19 = arith.subf %16, %18 : vector<128x128xf32>
    %c0_6 = arith.constant 0 : index
    %c0_7 = arith.constant 0 : index
    %20 = vector.load %arg3[%c0_6, %c0_7] : memref<128x128xf32, #tpu.memory_space<vmem>>, vector<128x128xf32>
    tpu.vector_store %arg3[%c0_6, %c0_7], %19 {strides = array<i32>} : memref<128x128xf32, #tpu.memory_space<vmem>>, vector<128x128xf32>,
    return
  }
  func.func @transform_0(%arg0: i32) -> (i32, i32) {
    %c0_i32 = arith.constant 0 : i32
    %c0_i32_0 = arith.constant 0 : i32
    return %arg0, %c0_i32 : i32, i32
  }
  func.func @transform_1(%arg0: i32) -> (i32, i32) {
    %c0_i32 = arith.constant 0 : i32
    %c0_i32_0 = arith.constant 0 : i32
    %c0_i32_1 = arith.constant 0 : i32
    return %c0_i32, %c0_i32_0 : i32, i32
  }
  func.func @transform_2(%arg0: i32) -> (i32, i32) {
    %c0_i32 = arith.constant 0 : i32
    %c0_i32_0 = arith.constant 0 : i32
    return %arg0, %c0_i32 : i32, i32
  }
}

</mosaic_0001>

<bundles_post_ra>
// kernel: gcn_forward.3
= control target key start
LH: loop header
LB: loop body
LE: loop exit
PB: predicated region body
PF: predicated region fallthrough
CT: control target
= control target key end

     0   :  { %8 = vsyncpa [#allocation3], 0  ;;  %s664_s0 = inlined_call_operand.hbm [shape: bf16[128,128], index: 0, kind: input, shape index: {}]   ;;  %s665_s1 = inlined_call_operand.hbm [shape: bf16[128,128], index: 1, kind: input, shape index: {}]   ;;  %s666_s2 = inlined_call_operand.vmem [shape: f32[1,128], index: 2, kind: input, shape index: {}]   ;;  %s667_s3 = inlined_call_operand.vmem [shape: bf16[128,128], index: 3, kind: output, shape index: {}]  }
   0x1   :  { %9 = vsyncpa [#allocation5], 0  ;;  %s589_s12 = smov [#allocation2]   ;;  %s541_s16 = scalar_lea.hbm %s664_s0, 1024 }
   0x2   :  { %s15_s13 = sshll.u32 %s589_s12, 4  ;;  %p542_p0 = scmp.ne.s32.totalorder %s664_s0, %s541_s16  ;;  %s16_s13 = int_to_ptr.vmem [resolvable:$true] %s15_s13 }
   0x3   :  { %p545_p1 = scmp.lt.u32.totalorder %s541_s16, %s664_s0 }
   0x5   :  { %p547_p2 = pnand %p545_p1, %p542_p0 }
   0x7   :  { %550 = shalt.err (!%p547_p2)
}
   0x8   :  { %s551_s21 = scalar_lea.vmem %s16_s13, 1024  ;;  %p556_p4 = scmp.lt.s32.totalorder %s16_s13, %s16_s13 }
   0x9   :  { %p552_p3 = scmp.ne.s32.totalorder %s16_s13, %s551_s21  ;;  %p557_p5 = scmp.lt.s32.totalorder %s551_s21, %s551_s21 }
   0xb   :  { %p558_p6 = por %p557_p5, %p556_p4 }
   0xd   :  { %p559_p7 = pnand %p558_p6, %p552_p3 }
   0xf   :  { %562 = shalt.err (!%p559_p7)
}
  0x10   :  { %s590_s22 = smov 64   ;;  %s591_s23 = smov 4  }
  0x11   :  { %21 = dma.hbm_to_vmem [thread:$0]  %s664_s0, 1024, %s16_s13, [#allocation3], %s590_s22, %s590_s22, %s591_s23  }
  0x12   :  { %s592_s26 = smov [#allocation4]   ;;  %s563_s30 = scalar_lea.hbm %s665_s1, 1024 }
  0x13   :  { %s27_s27 = sshll.u32 %s592_s26, 4  ;;  %p564_p8 = scmp.ne.s32.totalorder %s665_s1, %s563_s30  ;;  %s28_s27 = int_to_ptr.vmem [resolvable:$true] %s27_s27 }
  0x14   :  { %p567_p9 = scmp.lt.u32.totalorder %s563_s30, %s665_s1 }
  0x16   :  { %p569_p10 = pnand %p567_p9, %p564_p8 }
  0x18   :  { %572 = shalt.err (!%p569_p10)
}
  0x19   :  { %s573_s8 = scalar_lea.vmem %s28_s27, 1024  ;;  %p578_p12 = scmp.lt.s32.totalorder %s28_s27, %s28_s27 }
  0x1a   :  { %p574_p11 = scmp.ne.s32.totalorder %s28_s27, %s573_s8  ;;  %p579_p13 = scmp.lt.s32.totalorder %s573_s8, %s573_s8 }
  0x1c   :  { %p580_p0 = por %p579_p13, %p578_p12 }
  0x1e   :  { %p581_p1 = pnand %p580_p0, %p574_p11 }
  0x20   :  { %584 = shalt.err (!%p581_p1)
}
  0x21   :  { %33 = dma.hbm_to_vmem [thread:$0]  %s665_s1, 1024, %s28_s27, [#allocation5], %s590_s22, %s590_s22, %s591_s23  }
  0x22   :  { %585 = dma.done.wait [#allocation3], 1024  }
  0x23   :  { %586 = vsyncadd [#allocation3], 4294966272 }
  0x24   :  { %587 = dma.done.wait [#allocation5], 1024  }
  0x25   :  { %588 = vsyncadd [#allocation5], 4294966272  ;;  %v525_v0 = vld [vmem:[#allocation4] sm:$0xff]   ;;  %v526_v1 = vld [vmem:[#allocation4 + $0x8] sm:$0xff]  }
  0x26   :  { %473 = vmatprep.subr.bf16.mxu0 %v525_v0  ;;  %505 = vmatprep.subr.bf16.mxu1 %v525_v0  ;;  %v527_v2 = vld [vmem:[#allocation4 + $0x10] sm:$0xff]   ;;  %v528_v3 = vld [vmem:[#allocation4 + $0x18] sm:$0xff]   ;;  %v533_v4 = vld [vmem:[#allocation2] sm:$0xff]  }
  0x27   :  { %474 = vmatpush3.bf16.msra.mxu0 %v525_v0  ;;  %513 = vmatpush3.bf16.msra.mxu1 %v525_v0  ;;  %v534_v5 = vld [vmem:[#allocation2 + $0x20] sm:$0xff]   ;;  %v530_v7 = vld [vmem:[#allocation4 + $0x28] sm:$0xff]   ;;  %v531_v8 = vld [vmem:[#allocation4 + $0x30] sm:$0xff]  }
  0x28   :  { %475 = vmatprep.subr.bf16.mxu0 %v526_v1  ;;  %506 = vmatprep.subr.bf16.mxu1 %v526_v1  ;;  %v529_v6 = vld [vmem:[#allocation4 + $0x20] sm:$0xff]   ;;  %v532_v9 = vld [vmem:[#allocation4 + $0x38] sm:$0xff]   ;;  %v535_v10 = vld [vmem:[#allocation2 + $0x8] sm:$0xff]  }
  0x29   :  { %489 = vmatprep.mubr.bf16.mxu0 %v533_v4  ;;  %497 = vmatprep.mubr.bf16.mxu1 %v534_v5  ;;  %v536_v11 = vld [vmem:[#allocation2 + $0x28] sm:$0xff]   ;;  %v537_v12 = vld [vmem:[#allocation2 + $0x10] sm:$0xff]   ;;  %v539_v14 = vld [vmem:[#allocation2 + $0x18] sm:$0xff]  }
  0x2a   :  { %v538_v13 = vld [vmem:[#allocation2 + $0x30] sm:$0xff]   ;;  %v540_v15 = vld [vmem:[#allocation2 + $0x38] sm:$0xff]   ;;  %v361_v17 = vld [vmem:[%s666_s2] ss:$0 sm:$0xff] }
  0x2b   :  { %476 = vmatpush3.bf16.msra.mxu0 %v526_v1  ;;  %514 = vmatpush3.bf16.msra.mxu1 %v526_v1 }
  0x2c   :  { %477 = vmatprep.subr.bf16.mxu0 %v527_v2  ;;  %507 = vmatprep.subr.bf16.mxu1 %v527_v2 }
  0x2f   :  { %478 = vmatpush3.bf16.msra.mxu0 %v527_v2  ;;  %515 = vmatpush3.bf16.msra.mxu1 %v527_v2 }
  0x30   :  { %479 = vmatprep.subr.bf16.mxu0 %v528_v3  ;;  %508 = vmatprep.subr.bf16.mxu1 %v528_v3 }
  0x33   :  { %480 = vmatpush3.bf16.msra.mxu0 %v528_v3  ;;  %516 = vmatpush3.bf16.msra.mxu1 %v528_v3 }
  0x34   :  { %481 = vmatprep.subr.bf16.mxu0 %v529_v6  ;;  %509 = vmatprep.subr.bf16.mxu1 %v529_v6 }
  0x37   :  { %482 = vmatpush3.bf16.msra.mxu0 %v529_v6  ;;  %517 = vmatpush3.bf16.msra.mxu1 %v529_v6 }
  0x38   :  { %483 = vmatprep.subr.bf16.mxu0 %v530_v7  ;;  %510 = vmatprep.subr.bf16.mxu1 %v530_v7 }
  0x3b   :  { %484 = vmatpush3.bf16.msra.mxu0 %v530_v7  ;;  %518 = vmatpush3.bf16.msra.mxu1 %v530_v7 }
  0x3c   :  { %485 = vmatprep.subr.bf16.mxu0 %v531_v8  ;;  %511 = vmatprep.subr.bf16.mxu1 %v531_v8 }
  0x3f   :  { %486 = vmatpush3.bf16.msra.mxu0 %v531_v8  ;;  %519 = vmatpush3.bf16.msra.mxu1 %v531_v8 }
  0x40   :  { %487 = vmatprep.subr.bf16.mxu0 %v532_v9  ;;  %512 = vmatprep.subr.bf16.mxu1 %v532_v9 }
  0x43   :  { %488 = vmatpush3.bf16.msra.mxu0 %v532_v9  ;;  %520 = vmatpush3.bf16.msra.mxu1 %v532_v9 }
  0x46   :  { %490 = vmatmul.mubr.bf16.vlgmr.msra.gmra.mrb[0].mxu0 %v535_v10  ;;  %498 = vmatmul.mubr.bf16.vlgmr.msra.gmra.mrb[0].mxu1 %v536_v11 }
  0x47   :  { %493 = vmatprep.mubr.bf16.mxu0 %v537_v12  ;;  %501 = vmatprep.mubr.bf16.mxu1 %v538_v13 }
  0x4e   :  { %494 = vmatmul.mubr.bf16.gmra.mrb[4].mxu0 %v539_v14  ;;  %502 = vmatmul.mubr.bf16.gmra.mrb[4].mxu1 %v540_v15 }
 0x119   :  { %v491_v16 = vpop.f32.mrb[0].mxu0  ;;  %v499_v18 = vpop.f32.mrb[0].mxu1 }
 0x11a   :  { %v212_v19 = vpop.f32.mrb[1].mxu0  ;;  %v244_v20 = vpop.f32.mrb[1].mxu1  ;;  %v221_v23 = vadd.f32 %v491_v16, %v361_v17  ;;  %v253_v24 = vadd.f32 %v499_v18, %v361_v17 }
 0x11b   :  { %v492_v21 = vpop.f32.mrb[2].mxu0  ;;  %v500_v22 = vpop.f32.mrb[2].mxu1  ;;  %v213_v29 = vadd.f32 %v361_v17, %v212_v19  ;;  %v245_v30 = vadd.f32 %v361_v17, %v244_v20 }
 0x11c   :  { %v224_v25 = vadd.f32 %v492_v21, %v361_v17  ;;  %v256_v26 = vadd.f32 %v500_v22, %v361_v17  ;;  %v215_v27 = vpop.f32.mrb[3].mxu0  ;;  %v247_v28 = vpop.f32.mrb[3].mxu1 }
 0x11d   :  { %v216_v31 = vadd.f32 %v361_v17, %v215_v27  ;;  %v248_v32 = vadd.f32 %v361_v17, %v247_v28 }
 0x11e   :  { %v418_v33 = vpack.c.bf16 %v224_v25, %v221_v23  ;;  %v438_v34 = vpack.c.bf16 %v256_v26, %v253_v24 }
 0x11f   :  { %v413_v35 = vpack.c.bf16 %v216_v31, %v213_v29  ;;  %v433_v36 = vpack.c.bf16 %v248_v32, %v245_v30 }
 0x120   :  { %450 = vst [vmem:[%s667_s3 + $0x8] sm:$0xff] %v418_v33   ;;  %454 = vst [vmem:[%s667_s3 + $0x28] sm:$0xff] %v438_v34  }
 0x121   :  { %414 = vst [vmem:[%s667_s3] sm:$0xff] %v413_v35   ;;  %453 = vst [vmem:[%s667_s3 + $0x20] sm:$0xff] %v433_v36   ;;  %v495_v37 = vpop.f32.mrb[4].mxu0  ;;  %v503_v38 = vpop.f32.mrb[4].mxu1 }
 0x122   :  { %v228_v39 = vpop.f32.mrb[5].mxu0  ;;  %v260_v40 = vpop.f32.mrb[5].mxu1  ;;  %v237_v43 = vadd.f32 %v495_v37, %v361_v17  ;;  %v269_v44 = vadd.f32 %v503_v38, %v361_v17 }
 0x123   :  { %v496_v41 = vpop.f32.mrb[6].mxu0  ;;  %v504_v42 = vpop.f32.mrb[6].mxu1  ;;  %v229_v49 = vadd.f32 %v361_v17, %v228_v39  ;;  %v261_v50 = vadd.f32 %v361_v17, %v260_v40 }
 0x124   :  { %v240_v45 = vadd.f32 %v496_v41, %v361_v17  ;;  %v272_v46 = vadd.f32 %v504_v42, %v361_v17  ;;  %v231_v47 = vpop.f32.mrb[7].mxu0  ;;  %v263_v48 = vpop.f32.mrb[7].mxu1 }
 0x125   :  { %v232_v51 = vadd.f32 %v361_v17, %v231_v47  ;;  %v264_v52 = vadd.f32 %v361_v17, %v263_v48 }
 0x126   :  { %v428_v53 = vpack.c.bf16 %v240_v45, %v237_v43  ;;  %v448_v54 = vpack.c.bf16 %v272_v46, %v269_v44 }
 0x127   :  { %v423_v55 = vpack.c.bf16 %v232_v51, %v229_v49  ;;  %v443_v56 = vpack.c.bf16 %v264_v52, %v261_v50 }
 0x128   :  { %452 = vst [vmem:[%s667_s3 + $0x18] sm:$0xff] %v428_v53   ;;  %456 = vst [vmem:[%s667_s3 + $0x38] sm:$0xff] %v448_v54  }
 0x129   :  { %451 = vst [vmem:[%s667_s3 + $0x10] sm:$0xff] %v423_v55   ;;  %455 = vst [vmem:[%s667_s3 + $0x30] sm:$0xff] %v443_v56  }
 0x12a   :  { %359 = vsyncpa [#allocation3], 1 }
 0x12b   :  { %360 = vsyncpa [#allocation5], 1 }

// kernel: gcn_forward.5
= control target key start
LH: loop header
LB: loop body
LE: loop exit
PB: predicated region body
PF: predicated region fallthrough
CT: control target
= control target key end

     0   :  { %v237_v16 = vlaneseq  ;;  %s803_s1 = inlined_call_operand.vmem [shape: bf16[128,128], index: 1, kind: input, shape index: {}]   ;;  %s804_s0 = inlined_call_operand.vmem [shape: bf16[128,128], index: 0, kind: input, shape index: {}]   ;;  %s805_s2 = inlined_call_operand.vmem [shape: f32[128,128], index: 2, kind: output, shape index: {}]  }
   0x1   :  { %v516_v0 = vld [vmem:[%s803_s1] sm:$0xff]   ;;  %v517_v1 = vld [vmem:[%s803_s1 + $0x8] sm:$0xff]   ;;  %v518_v2 = vld [vmem:[%s803_s1 + $0x10] sm:$0xff]  }
   0x2   :  { %468 = vmatprep.subr.bf16.mxu0 %v516_v0  ;;  %500 = vmatprep.subr.bf16.mxu1 %v516_v0  ;;  %v519_v3 = vld [vmem:[%s803_s1 + $0x18] sm:$0xff]   ;;  %v524_v4 = vld [vmem:[%s804_s0] sm:$0xff]   ;;  %v521_v7 = vld [vmem:[%s803_s1 + $0x28] sm:$0xff]   ;;  %v238_v17 = vand.u32 127, %v237_v16 }
   0x3   :  { %469 = vmatpush3.bf16.msra.mxu0 %v516_v0  ;;  %508 = vmatpush3.bf16.msra.mxu1 %v516_v0  ;;  %v525_v5 = vld [vmem:[%s804_s0 + $0x20] sm:$0xff]   ;;  %v522_v8 = vld [vmem:[%s803_s1 + $0x30] sm:$0xff]   ;;  %v523_v9 = vld [vmem:[%s803_s1 + $0x38] sm:$0xff]  }
   0x4   :  { %470 = vmatprep.subr.bf16.mxu0 %v517_v1  ;;  %501 = vmatprep.subr.bf16.mxu1 %v517_v1  ;;  %v520_v6 = vld [vmem:[%s803_s1 + $0x20] sm:$0xff]   ;;  %v526_v10 = vld [vmem:[%s804_s0 + $0x8] sm:$0xff]   ;;  %v528_v12 = vld [vmem:[%s804_s0 + $0x10] sm:$0xff]   ;;  %vm239_vm0 = vcmp.lt.s32.totalorder %v238_v17, 8 }
   0x5   :  { %484 = vmatprep.mubr.bf16.mxu0 %v524_v4  ;;  %492 = vmatprep.mubr.bf16.mxu1 %v525_v5  ;;  %v527_v11 = vld [vmem:[%s804_s0 + $0x28] sm:$0xff]   ;;  %v530_v13 = vld [vmem:[%s804_s0 + $0x30] sm:$0xff]   ;;  %v529_v14 = vld [vmem:[%s804_s0 + $0x18] sm:$0xff]  }
   0x6   :  { %v531_v15 = vld [vmem:[%s804_s0 + $0x38] sm:$0xff]  }
   0x7   :  { %471 = vmatpush3.bf16.msra.mxu0 %v517_v1  ;;  %509 = vmatpush3.bf16.msra.mxu1 %v517_v1 }
   0x8   :  { %472 = vmatprep.subr.bf16.mxu0 %v518_v2  ;;  %502 = vmatprep.subr.bf16.mxu1 %v518_v2 }
   0xb   :  { %473 = vmatpush3.bf16.msra.mxu0 %v518_v2  ;;  %510 = vmatpush3.bf16.msra.mxu1 %v518_v2 }
   0xc   :  { %474 = vmatprep.subr.bf16.mxu0 %v519_v3  ;;  %503 = vmatprep.subr.bf16.mxu1 %v519_v3 }
   0xf   :  { %475 = vmatpush3.bf16.msra.mxu0 %v519_v3  ;;  %511 = vmatpush3.bf16.msra.mxu1 %v519_v3 }
  0x10   :  { %476 = vmatprep.subr.bf16.mxu0 %v520_v6  ;;  %504 = vmatprep.subr.bf16.mxu1 %v520_v6 }
  0x13   :  { %477 = vmatpush3.bf16.msra.mxu0 %v520_v6  ;;  %512 = vmatpush3.bf16.msra.mxu1 %v520_v6 }
  0x14   :  { %478 = vmatprep.subr.bf16.mxu0 %v521_v7  ;;  %505 = vmatprep.subr.bf16.mxu1 %v521_v7 }
  0x17   :  { %479 = vmatpush3.bf16.msra.mxu0 %v521_v7  ;;  %513 = vmatpush3.bf16.msra.mxu1 %v521_v7 }
  0x18   :  { %480 = vmatprep.subr.bf16.mxu0 %v522_v8  ;;  %506 = vmatprep.subr.bf16.mxu1 %v522_v8 }
  0x1b   :  { %481 = vmatpush3.bf16.msra.mxu0 %v522_v8  ;;  %514 = vmatpush3.bf16.msra.mxu1 %v522_v8 }
  0x1c   :  { %482 = vmatprep.subr.bf16.mxu0 %v523_v9  ;;  %507 = vmatprep.subr.bf16.mxu1 %v523_v9 }
  0x1f   :  { %483 = vmatpush3.bf16.msra.mxu0 %v523_v9  ;;  %515 = vmatpush3.bf16.msra.mxu1 %v523_v9 }
  0x22   :  { %485 = vmatmul.mubr.bf16.vlgmr.msra.gmra.mrb[0].mxu0 %v526_v10  ;;  %493 = vmatmul.mubr.bf16.vlgmr.msra.gmra.mrb[0].mxu1 %v527_v11 }
  0x23   :  { %488 = vmatprep.mubr.bf16.mxu0 %v528_v12  ;;  %496 = vmatprep.mubr.bf16.mxu1 %v530_v13 }
  0x2a   :  { %489 = vmatmul.mubr.bf16.gmra.mrb[4].mxu0 %v529_v14  ;;  %497 = vmatmul.mubr.bf16.gmra.mrb[4].mxu1 %v531_v15 }
  0xf5   :  { %v486_v18 = vpop.f32.mrb[0].mxu0  ;;  %v494_v19 = vpop.f32.mrb[0].mxu1 }
  0xf6   :  { %v174_v20 = vpop.f32.mrb[1].mxu0  ;;  %v206_v21 = vpop.f32.mrb[1].mxu1  ;;  %v250_v22 = vsel %vm239_vm0, %v494_v19, -1e+30  ;;  %v242_v23 = vsel %vm239_vm0, %v486_v18, -1e+30 }
  0xf7   :  { %276 = vmax.xlane.f32.xlu0 %v250_v22  ;;  %v495_v24 = vpop.f32.mrb[2].mxu1  ;;  %260 = vmax.xlane.f32.xlu1 %v242_v23  ;;  %v487_v25 = vpop.f32.mrb[2].mxu0  ;;  %v240_v28 = vsel %vm239_vm0, %v174_v20, -1e+30  ;;  %v248_v32 = vsel %vm239_vm0, %v206_v21, -1e+30 }
  0xf8   :  { %v177_v26 = vpop.f32.mrb[3].mxu0  ;;  %v209_v27 = vpop.f32.mrb[3].mxu1  ;;  %v243_v29 = vsel %vm239_vm0, %v487_v25, -1e+30  ;;  %v251_v33 = vsel %vm239_vm0, %v495_v24, -1e+30 }
  0xf9   :  { %v249_v40 = vsel %vm239_vm0, %v209_v27, -1e+30  ;;  %v241_v41 = vsel %vm239_vm0, %v177_v26, -1e+30 }
  0xfb   :  { %256 = vmax.xlane.f32.xlu0 %v240_v28  ;;  %262 = vmax.xlane.f32.xlu1 %v243_v29 }
  0xfd   :  { %v490_v30 = vpop.f32.mrb[4].mxu0  ;;  %v498_v31 = vpop.f32.mrb[4].mxu1 }
  0xfe   :  { %v190_v34 = vpop.f32.mrb[5].mxu0  ;;  %v222_v35 = vpop.f32.mrb[5].mxu1  ;;  %v246_v42 = vsel %vm239_vm0, %v490_v30, -1e+30  ;;  %v680_v48 = vsel %vm239_vm0, %v498_v31, -1e+30 }
  0xff   :  { %272 = vmax.xlane.f32.xlu0 %v248_v32  ;;  %278 = vmax.xlane.f32.xlu1 %v251_v33  ;;  %v491_v36 = vpop.f32.mrb[6].mxu0  ;;  %v499_v37 = vpop.f32.mrb[6].mxu1  ;;  %v244_v44 = vsel %vm239_vm0, %v190_v34, -1e+30  ;;  %v672_v46 = vsel %vm239_vm0, %v222_v35, -1e+30 }
 0x100   :  { %v193_v38 = vpop.f32.mrb[7].mxu0  ;;  %v225_v39 = vpop.f32.mrb[7].mxu1  ;;  %v247_v43 = vsel %vm239_vm0, %v491_v36, -1e+30  ;;  %v683_v49 = vsel %vm239_vm0, %v499_v37, -1e+30 }
 0x101   :  { %v245_v45 = vsel %vm239_vm0, %v193_v38, -1e+30  ;;  %v675_v47 = vsel %vm239_vm0, %v225_v39, -1e+30 }
 0x103   :  { %274 = vmax.xlane.f32.xlu1 %v249_v40  ;;  %258 = vmax.xlane.f32.xlu0 %v241_v41 }
 0x107   :  { %268 = vmax.xlane.f32.xlu0 %v246_v42  ;;  %270 = vmax.xlane.f32.xlu1 %v247_v43 }
 0x10b   :  { %264 = vmax.xlane.f32.xlu0 %v244_v44  ;;  %266 = vmax.xlane.f32.xlu1 %v245_v45 }
 0x10f   :  { %280 = vmax.xlane.f32.xlu0 %v672_v46  ;;  %282 = vmax.xlane.f32.xlu1 %v675_v47 }
 0x113   :  { %284 = vmax.xlane.f32.xlu0 %v680_v48  ;;  %286 = vmax.xlane.f32.xlu1 %v683_v49 }
 0x184   :  { %v277_v50 = vpop.xlane.xlu0 %276  ;;  %v261_v51 = vpop.xlane.xlu1 %260 }
 0x185   :  { %v687_v52 = vsub.f32 %v250_v22, %v277_v50  ;;  %v689_v53 = vsub.f32 %v242_v23, %v261_v51 }
 0x187   :  { %v308_v54 = vmul.f32 1.442695, %v689_v53  ;;  %v324_v57 = vmul.f32 1.442695, %v687_v52 }
 0x188   :  { %v257_v55 = vpop.xlane.xlu0 %256  ;;  %v263_v56 = vpop.xlane.xlu1 %262 }
 0x189   :  { %v693_v58 = vsub.f32 %v240_v28, %v257_v55  ;;  %v695_v59 = vsub.f32 %v243_v29, %v263_v56  ;;  %532 = vpow2.f32 %v308_v54 }
 0x18a   :  { %534 = vpow2.f32 %v324_v57 }
 0x18b   :  { %v310_v60 = vmul.f32 1.442695, %v695_v59  ;;  %v304_v63 = vmul.f32 1.442695, %v693_v58 }
 0x18c   :  { %v273_v61 = vpop.xlane.xlu0 %272  ;;  %v279_v62 = vpop.xlane.xlu1 %278 }
 0x18d   :  { %v699_v0 = vsub.f32 %v248_v32, %v273_v61  ;;  %v701_v1 = vsub.f32 %v251_v33, %v279_v62  ;;  %536 = vpow2.f32 %v310_v60 }
 0x18e   :  { %538 = vpow2.f32 %v304_v63 }
 0x18f   :  { %v326_v2 = vmul.f32 1.442695, %v701_v1  ;;  %v320_v5 = vmul.f32 1.442695, %v699_v0 }
 0x190   :  { %v275_v3 = vpop.xlane.xlu1 %274  ;;  %v259_v4 = vpop.xlane.xlu0 %258 }
 0x191   :  { %v705_v6 = vsub.f32 %v241_v41, %v259_v4  ;;  %540 = vpow2.f32 %v326_v2  ;;  %v707_v7 = vsub.f32 %v249_v40, %v275_v3 }
 0x192   :  { %542 = vpow2.f32 %v320_v5 }
 0x193   :  { %v306_v8 = vmul.f32 1.442695, %v705_v6  ;;  %v533_v9 = vpop.eup %532  ;;  %v322_v13 = vmul.f32 1.442695, %v707_v7 }
 0x194   :  { %v269_v10 = vpop.xlane.xlu0 %268  ;;  %v271_v11 = vpop.xlane.xlu1 %270  ;;  %340 = vadd.xlane.f32.xlu0 %v533_v9 }
 0x195   :  { %v710_v12 = vsub.f32 %v246_v42, %v269_v10  ;;  %544 = vpow2.f32 %v306_v8  ;;  %v713_v14 = vsub.f32 %v247_v43, %v271_v11  ;;  %v535_v15 = vpop.eup %534 }
 0x197   :  { %v316_v16 = vmul.f32 1.442695, %v710_v12  ;;  %v537_v17 = vpop.eup %536  ;;  %v318_v21 = vmul.f32 1.442695, %v713_v14 }
 0x198   :  { %v265_v18 = vpop.xlane.xlu0 %264  ;;  %v267_v19 = vpop.xlane.xlu1 %266  ;;  %356 = vadd.xlane.f32.xlu0 %v535_v15  ;;  %342 = vadd.xlane.f32.xlu1 %v537_v17 }
 0x199   :  { %546 = vpow2.f32 %v316_v16  ;;  %v716_v20 = vsub.f32 %v244_v44, %v265_v18  ;;  %v719_v22 = vsub.f32 %v245_v45, %v267_v19  ;;  %v539_v23 = vpop.eup %538 }
 0x19a   :  { %548 = vpow2.f32 %v322_v13 }
 0x19b   :  { %v312_v24 = vmul.f32 1.442695, %v716_v20  ;;  %v541_v25 = vpop.eup %540  ;;  %v314_v29 = vmul.f32 1.442695, %v719_v22 }
 0x19c   :  { %v281_v26 = vpop.xlane.xlu0 %280  ;;  %v283_v27 = vpop.xlane.xlu1 %282  ;;  %336 = vadd.xlane.f32.xlu0 %v539_v23  ;;  %358 = vadd.xlane.f32.xlu1 %v541_v25 }
 0x19d   :  { %550 = vpow2.f32 %v312_v24  ;;  %v723_v28 = vsub.f32 %v672_v46, %v281_v26  ;;  %v727_v30 = vsub.f32 %v675_v47, %v283_v27  ;;  %v543_v31 = vpop.eup %542 }
 0x19e   :  { %552 = vpow2.f32 %v318_v21 }
 0x19f   :  { %v328_v32 = vmul.f32 1.442695, %v723_v28  ;;  %v545_v33 = vpop.eup %544  ;;  %v330_v37 = vmul.f32 1.442695, %v727_v30 }
 0x1a0   :  { %v285_v34 = vpop.xlane.xlu0 %284  ;;  %v287_v35 = vpop.xlane.xlu1 %286  ;;  %352 = vadd.xlane.f32.xlu0 %v543_v31  ;;  %338 = vadd.xlane.f32.xlu1 %v545_v33 }
 0x1a1   :  { %554 = vpow2.f32 %v328_v32  ;;  %v731_v36 = vsub.f32 %v680_v48, %v285_v34  ;;  %v735_v38 = vsub.f32 %v683_v49, %v287_v35 }
 0x1a2   :  { %556 = vpow2.f32 %v314_v29 }
 0x1a3   :  { %v547_v39 = vpop.eup %546  ;;  %v332_v40 = vmul.f32 1.442695, %v731_v36  ;;  %v334_v42 = vmul.f32 1.442695, %v735_v38 }
 0x1a4   :  { %v549_v41 = vpop.eup %548  ;;  %348 = vadd.xlane.f32.xlu0 %v547_v39 }
 0x1a5   :  { %558 = vpow2.f32 %v332_v40  ;;  %354 = vadd.xlane.f32.xlu1 %v549_v41 }
 0x1a6   :  { %560 = vpow2.f32 %v330_v37 }
 0x1a7   :  { %v551_v43 = vpop.eup %550  ;;  %562 = vpow2.f32 %v334_v42 }
 0x1a8   :  { %v553_v44 = vpop.eup %552  ;;  %344 = vadd.xlane.f32.xlu0 %v551_v43 }
 0x1a9   :  { %350 = vadd.xlane.f32.xlu1 %v553_v44 }
 0x1ab   :  { %v555_v45 = vpop.eup %554 }
 0x1ac   :  { %v557_v46 = vpop.eup %556  ;;  %360 = vadd.xlane.f32.xlu0 %v555_v45 }
 0x1ad   :  { %346 = vadd.xlane.f32.xlu1 %v557_v46 }
 0x1af   :  { %v559_v47 = vpop.eup %558 }
 0x1b0   :  { %v561_v48 = vpop.eup %560  ;;  %364 = vadd.xlane.f32.xlu0 %v559_v47 }
 0x1b1   :  { %362 = vadd.xlane.f32.xlu1 %v561_v48  ;;  %v563_v49 = vpop.eup %562 }
 0x1b5   :  { %366 = vadd.xlane.f32.xlu1 %v563_v49 }
 0x221   :  { %v341_v50 = vpop.xlane.xlu0 %340 }
 0x222   :  { %564 = vlog2.f32 %v341_v50 }
 0x225   :  { %v357_v51 = vpop.xlane.xlu0 %356  ;;  %v343_v54 = vpop.xlane.xlu1 %342 }
 0x226   :  { %566 = vlog2.f32 %v357_v51 }
 0x227   :  { %568 = vlog2.f32 %v343_v54 }
 0x229   :  { %v337_v55 = vpop.xlane.xlu0 %336  ;;  %v359_v56 = vpop.xlane.xlu1 %358 }
 0x22a   :  { %570 = vlog2.f32 %v337_v55 }
 0x22b   :  { %572 = vlog2.f32 %v359_v56 }
 0x22c   :  { %v565_v57 = vpop.eup %564 }
 0x22d   :  { %v373_v60 = vmul.f32 0.6931472, %v565_v57  ;;  %v353_v61 = vpop.xlane.xlu0 %352  ;;  %v339_v62 = vpop.xlane.xlu1 %338 }
 0x22e   :  { %574 = vlog2.f32 %v353_v61 }
 0x22f   :  { %v402_v63 = vsub.f32 %v689_v53, %v373_v60  ;;  %576 = vlog2.f32 %v339_v62 }
 0x230   :  { %v567_v2 = vpop.eup %566 }
 0x231   :  { %v569_v3 = vpop.eup %568  ;;  %418 = vst [vmem:[%s805_s2 + $0x10] sm:$0xff] %v402_v63  ;;  %v389_v4 = vmul.f32 0.6931472, %v567_v2  ;;  %v349_v5 = vpop.xlane.xlu0 %348 }
 0x232   :  { %v355_v8 = vpop.xlane.xlu1 %354  ;;  %v375_v9 = vmul.f32 0.6931472, %v569_v3  ;;  %578 = vlog2.f32 %v349_v5 }
 0x233   :  { %v410_v10 = vsub.f32 %v687_v52, %v389_v4  ;;  %580 = vlog2.f32 %v355_v8 }
 0x234   :  { %v571_v11 = vpop.eup %570  ;;  %v403_v13 = vsub.f32 %v695_v59, %v375_v9 }
 0x235   :  { %v573_v15 = vpop.eup %572  ;;  %426 = vst [vmem:[%s805_s2 + $0x50] sm:$0xff] %v410_v10  ;;  %v369_v53 = vmul.f32 0.6931472, %v571_v11  ;;  %v345_v16 = vpop.xlane.xlu0 %344 }
 0x236   :  { %v351_v17 = vpop.xlane.xlu1 %350  ;;  %419 = vst [vmem:[%s805_s2 + $0x18] sm:$0xff] %v403_v13  ;;  %v391_v18 = vmul.f32 0.6931472, %v573_v15  ;;  %582 = vlog2.f32 %v345_v16 }
 0x237   :  { %v400_v52 = vsub.f32 %v693_v58, %v369_v53  ;;  %584 = vlog2.f32 %v351_v17 }
 0x238   :  { %v575_v19 = vpop.eup %574  ;;  %v411_v59 = vsub.f32 %v701_v1, %v391_v18 }
 0x239   :  { %v577_v21 = vpop.eup %576  ;;  %416 = vst [vmem:[%s805_s2] sm:$0xff] %v400_v52  ;;  %v385_v23 = vmul.f32 0.6931472, %v575_v19  ;;  %v361_v24 = vpop.xlane.xlu0 %360 }
 0x23a   :  { %v347_v25 = vpop.xlane.xlu1 %346  ;;  %427 = vst [vmem:[%s805_s2 + $0x58] sm:$0xff] %v411_v59  ;;  %v371_v26 = vmul.f32 0.6931472, %v577_v21  ;;  %586 = vlog2.f32 %v361_v24 }
 0x23b   :  { %v408_v58 = vsub.f32 %v699_v0, %v385_v23  ;;  %588 = vlog2.f32 %v347_v25 }
 0x23c   :  { %v579_v27 = vpop.eup %578  ;;  %v401_v1 = vsub.f32 %v705_v6, %v371_v26 }
 0x23d   :  { %v581_v29 = vpop.eup %580  ;;  %424 = vst [vmem:[%s805_s2 + $0x40] sm:$0xff] %v408_v58  ;;  %v381_v31 = vmul.f32 0.6931472, %v579_v27  ;;  %v365_v32 = vpop.xlane.xlu0 %364 }
 0x23e   :  { %v363_v33 = vpop.xlane.xlu1 %362  ;;  %417 = vst [vmem:[%s805_s2 + $0x8] sm:$0xff] %v401_v1  ;;  %v387_v34 = vmul.f32 0.6931472, %v581_v29  ;;  %590 = vlog2.f32 %v365_v32 }
 0x23f   :  { %v406_v0 = vsub.f32 %v710_v12, %v381_v31  ;;  %592 = vlog2.f32 %v363_v33 }
 0x240   :  { %v583_v35 = vpop.eup %582  ;;  %v409_v6 = vsub.f32 %v707_v7, %v387_v34 }
 0x241   :  { %v585_v37 = vpop.eup %584  ;;  %422 = vst [vmem:[%s805_s2 + $0x30] sm:$0xff] %v406_v0  ;;  %v377_v39 = vmul.f32 0.6931472, %v583_v35 }
 0x242   :  { %v367_v40 = vpop.xlane.xlu1 %366  ;;  %425 = vst [vmem:[%s805_s2 + $0x48] sm:$0xff] %v409_v6  ;;  %v383_v41 = vmul.f32 0.6931472, %v585_v37 }
 0x243   :  { %594 = vlog2.f32 %v367_v40  ;;  %v404_v42 = vsub.f32 %v716_v20, %v377_v39 }
 0x244   :  { %v587_v12 = vpop.eup %586  ;;  %v407_v43 = vsub.f32 %v713_v14, %v383_v41 }
 0x245   :  { %v589_v44 = vpop.eup %588  ;;  %420 = vst [vmem:[%s805_s2 + $0x20] sm:$0xff] %v404_v42  ;;  %v393_v7 = vmul.f32 0.6931472, %v587_v12 }
 0x246   :  { %423 = vst [vmem:[%s805_s2 + $0x38] sm:$0xff] %v407_v43  ;;  %v379_v45 = vmul.f32 0.6931472, %v589_v44 }
 0x247   :  { %v412_v46 = vsub.f32 %v723_v28, %v393_v7 }
 0x248   :  { %v591_v47 = vpop.eup %590  ;;  %v405_v48 = vsub.f32 %v719_v22, %v379_v45 }
 0x249   :  { %v593_v20 = vpop.eup %592  ;;  %428 = vst [vmem:[%s805_s2 + $0x60] sm:$0xff] %v412_v46  ;;  %v397_v14 = vmul.f32 0.6931472, %v591_v47 }
 0x24a   :  { %421 = vst [vmem:[%s805_s2 + $0x28] sm:$0xff] %v405_v48  ;;  %v395_v49 = vmul.f32 0.6931472, %v593_v20 }
 0x24b   :  { %v414_v50 = vsub.f32 %v731_v36, %v397_v14 }
 0x24c   :  { %v413_v54 = vsub.f32 %v727_v30, %v395_v49 }
 0x24d   :  { %v595_v51 = vpop.eup %594  ;;  %430 = vst [vmem:[%s805_s2 + $0x70] sm:$0xff] %v414_v50 }
 0x24e   :  { %v399_v22 = vmul.f32 0.6931472, %v595_v51  ;;  %429 = vst [vmem:[%s805_s2 + $0x68] sm:$0xff] %v413_v54 }
 0x250   :  { %v415_v28 = vsub.f32 %v735_v38, %v399_v22 }
 0x252   :  { %431 = vst [vmem:[%s805_s2 + $0x78] sm:$0xff] %v415_v28 }

// kernel: gcn_forward.4
= control target key start
LH: loop header
LB: loop body
LE: loop exit
PB: predicated region body
PF: predicated region fallthrough
CT: control target
= control target key end

     0   :  { %s867_s1 = inlined_call_operand.vmem [shape: bf16[128,128], index: 1, kind: input, shape index: {}]   ;;  %s868_s0 = inlined_call_operand.vmem [shape: bf16[128,128], index: 0, kind: input, shape index: {}]   ;;  %s869_s2 = inlined_call_operand.vmem [shape: bf16[128,128], index: 2, kind: input, shape index: {}]   ;;  %s870_s3 = inlined_call_operand.vmem [shape: f32[1,128], index: 3, kind: input, shape index: {}]   ;;  %s871_s4 = inlined_call_operand.vmem [shape: bf16[128,128], index: 4, kind: output, shape index: {}]  }
   0x1   :  { %v719_v0 = vld [vmem:[%s867_s1] sm:$0xff]   ;;  %v720_v1 = vld [vmem:[%s867_s1 + $0x8] sm:$0xff]   ;;  %v721_v2 = vld [vmem:[%s867_s1 + $0x10] sm:$0xff]  }
   0x2   :  { %655 = vmatprep.subr.bf16.mxu0 %v719_v0  ;;  %v722_v3 = vld [vmem:[%s867_s1 + $0x18] sm:$0xff]   ;;  %v727_v4 = vld [vmem:[%s868_s0] sm:$0xff]   ;;  %v724_v6 = vld [vmem:[%s867_s1 + $0x28] sm:$0xff]  }
   0x3   :  { %656 = vmatpush3.bf16.msra.mxu0 %v719_v0  ;;  %671 = vmatprep.mubr.bf16.mxu0 %v727_v4  ;;  %v723_v5 = vld [vmem:[%s867_s1 + $0x20] sm:$0xff]   ;;  %v736_v8 = vld [vmem:[%s869_s2 + $0x8] sm:$0xff]   ;;  %v725_v9 = vld [vmem:[%s867_s1 + $0x30] sm:$0xff]  }
   0x4   :  { %657 = vmatprep.subr.bf16.mxu0 %v720_v1  ;;  %v735_v7 = vld [vmem:[%s869_s2] sm:$0xff]   ;;  %v737_v10 = vld [vmem:[%s869_s2 + $0x10] sm:$0xff]   ;;  %v726_v11 = vld [vmem:[%s867_s1 + $0x38] sm:$0xff]  }
   0x5   :  { %687 = vmatprep.subr.bf16.mxu1 %v735_v7  ;;  %v738_v12 = vld [vmem:[%s869_s2 + $0x18] sm:$0xff]   ;;  %v739_v13 = vld [vmem:[%s869_s2 + $0x20] sm:$0xff]   ;;  %v728_v14 = vld [vmem:[%s868_s0 + $0x8] sm:$0xff]  }
   0x6   :  { %688 = vmatpush3.bf16.msra.mxu1 %v735_v7  ;;  %v729_v15 = vld [vmem:[%s868_s0 + $0x10] sm:$0xff]   ;;  %v740_v16 = vld [vmem:[%s869_s2 + $0x28] sm:$0xff]   ;;  %v730_v17 = vld [vmem:[%s868_s0 + $0x18] sm:$0xff]  }
   0x7   :  { %658 = vmatpush3.bf16.msra.mxu0 %v720_v1  ;;  %689 = vmatprep.subr.bf16.mxu1 %v736_v8  ;;  %v731_v18 = vld [vmem:[%s868_s0 + $0x20] sm:$0xff]   ;;  %v732_v19 = vld [vmem:[%s868_s0 + $0x28] sm:$0xff]   ;;  %v733_v20 = vld [vmem:[%s868_s0 + $0x30] sm:$0xff]  }
   0x8   :  { %659 = vmatprep.subr.bf16.mxu0 %v721_v2  ;;  %v734_v21 = vld [vmem:[%s868_s0 + $0x38] sm:$0xff]   ;;  %v741_v22 = vld [vmem:[%s869_s2 + $0x30] sm:$0xff]   ;;  %v535_v1 = vld [vmem:[%s870_s3] ss:$0 sm:$0xff] }
   0x9   :  { %v742_v23 = vld [vmem:[%s869_s2 + $0x38] sm:$0xff]  }
   0xa   :  { %690 = vmatpush3.bf16.msra.mxu1 %v736_v8 }
   0xb   :  { %660 = vmatpush3.bf16.msra.mxu0 %v721_v2  ;;  %691 = vmatprep.subr.bf16.mxu1 %v737_v10 }
   0xc   :  { %661 = vmatprep.subr.bf16.mxu0 %v722_v3 }
   0xe   :  { %692 = vmatpush3.bf16.msra.mxu1 %v737_v10 }
   0xf   :  { %662 = vmatpush3.bf16.msra.mxu0 %v722_v3  ;;  %693 = vmatprep.subr.bf16.mxu1 %v738_v12 }
  0x10   :  { %663 = vmatprep.subr.bf16.mxu0 %v723_v5 }
  0x12   :  { %694 = vmatpush3.bf16.msra.mxu1 %v738_v12 }
  0x13   :  { %664 = vmatpush3.bf16.msra.mxu0 %v723_v5  ;;  %695 = vmatprep.subr.bf16.mxu1 %v739_v13 }
  0x14   :  { %665 = vmatprep.subr.bf16.mxu0 %v724_v6 }
  0x16   :  { %696 = vmatpush3.bf16.msra.mxu1 %v739_v13 }
  0x17   :  { %666 = vmatpush3.bf16.msra.mxu0 %v724_v6  ;;  %697 = vmatprep.subr.bf16.mxu1 %v740_v16 }
  0x18   :  { %667 = vmatprep.subr.bf16.mxu0 %v725_v9 }
  0x1a   :  { %698 = vmatpush3.bf16.msra.mxu1 %v740_v16 }
  0x1b   :  { %668 = vmatpush3.bf16.msra.mxu0 %v725_v9  ;;  %699 = vmatprep.subr.bf16.mxu1 %v741_v22 }
  0x1c   :  { %669 = vmatprep.subr.bf16.mxu0 %v726_v11 }
  0x1e   :  { %700 = vmatpush3.bf16.msra.mxu1 %v741_v22 }
  0x1f   :  { %670 = vmatpush3.bf16.msra.mxu0 %v726_v11  ;;  %701 = vmatprep.subr.bf16.mxu1 %v742_v23 }
  0x22   :  { %672 = vmatmul.mubr.bf16.vlgmr.msra.gmra.mrb[0].mxu0 %v728_v14  ;;  %702 = vmatpush3.bf16.msra.mxu1 %v742_v23 }
  0x23   :  { %675 = vmatprep.mubr.bf16.mxu0 %v729_v15 }
  0x2a   :  { %676 = vmatmul.mubr.bf16.gmra.mrb[4].mxu0 %v730_v17 }
  0x2b   :  { %679 = vmatprep.mubr.bf16.mxu0 %v731_v18 }
  0x32   :  { %680 = vmatmul.mubr.bf16.gmra.mrb[8].mxu0 %v732_v19 }
  0x33   :  { %683 = vmatprep.mubr.bf16.mxu0 %v733_v20 }
  0x3a   :  { %684 = vmatmul.mubr.bf16.gmra.mrb[12].mxu0 %v734_v21 }
  0xf5   :  { %v673_v24 = vpop.f32.mrb[0].mxu0 }
  0xf6   :  { %v180_v25 = vpop.f32.mrb[1].mxu0  ;;  %v245_v27 = vmax.f32 %v673_v24, 0.0 }
  0xf7   :  { %v674_v26 = vpop.f32.mrb[2].mxu0  ;;  %v243_v30 = vmax.f32 %v180_v25, 0.0 }
  0xf8   :  { %v246_v28 = vmax.f32 %v674_v26, 0.0  ;;  %v183_v29 = vpop.f32.mrb[3].mxu0 }
  0xf9   :  { %v244_v31 = vmax.f32 %v183_v29, 0.0 }
  0xfa   :  { %v260_v32 = vpack.c.bf16 %v246_v28, %v245_v27 }
  0xfb   :  { %v259_v33 = vpack.c.bf16 %v244_v31, %v243_v30 }
  0xfd   :  { %v677_v34 = vpop.f32.mrb[4].mxu0  ;;  %703 = vmatprep.mubr.bf16.mxu1 %v259_v33 }
  0xfe   :  { %v196_v35 = vpop.f32.mrb[5].mxu0  ;;  %704 = vmatmul.mubr.bf16.vlgmr.msra.gmra.mrb[0].mxu1 %v260_v32  ;;  %v249_v37 = vmax.f32 %v677_v34, 0.0 }
  0xff   :  { %v678_v36 = vpop.f32.mrb[6].mxu0  ;;  %v247_v40 = vmax.f32 %v196_v35, 0.0 }
 0x100   :  { %v250_v38 = vmax.f32 %v678_v36, 0.0  ;;  %v199_v39 = vpop.f32.mrb[7].mxu0 }
 0x101   :  { %v248_v41 = vmax.f32 %v199_v39, 0.0 }
 0x102   :  { %v262_v42 = vpack.c.bf16 %v250_v38, %v249_v37 }
 0x103   :  { %v261_v43 = vpack.c.bf16 %v248_v41, %v247_v40 }
 0x105   :  { %v681_v44 = vpop.f32.mrb[8].mxu0  ;;  %707 = vmatprep.mubr.bf16.mxu1 %v261_v43 }
 0x106   :  { %v212_v45 = vpop.f32.mrb[9].mxu0  ;;  %708 = vmatmul.mubr.bf16.gmra.mrb[4].mxu1 %v262_v42  ;;  %v253_v47 = vmax.f32 %v681_v44, 0.0 }
 0x107   :  { %v682_v46 = vpop.f32.mrb[10].mxu0  ;;  %v251_v50 = vmax.f32 %v212_v45, 0.0 }
 0x108   :  { %v254_v48 = vmax.f32 %v682_v46, 0.0  ;;  %v215_v49 = vpop.f32.mrb[11].mxu0 }
 0x109   :  { %v252_v51 = vmax.f32 %v215_v49, 0.0 }
 0x10a   :  { %v264_v52 = vpack.c.bf16 %v254_v48, %v253_v47 }
 0x10b   :  { %v263_v53 = vpack.c.bf16 %v252_v51, %v251_v50 }
 0x10d   :  { %v685_v54 = vpop.f32.mrb[12].mxu0  ;;  %711 = vmatprep.mubr.bf16.mxu1 %v263_v53 }
 0x10e   :  { %v228_v55 = vpop.f32.mrb[13].mxu0  ;;  %712 = vmatmul.mubr.bf16.gmra.mrb[8].mxu1 %v264_v52  ;;  %v257_v57 = vmax.f32 %v685_v54, 0.0 }
 0x10f   :  { %v686_v56 = vpop.f32.mrb[14].mxu0  ;;  %v255_v60 = vmax.f32 %v228_v55, 0.0 }
 0x110   :  { %v258_v58 = vmax.f32 %v686_v56, 0.0  ;;  %v231_v59 = vpop.f32.mrb[15].mxu0 }
 0x111   :  { %v256_v61 = vmax.f32 %v231_v59, 0.0 }
 0x112   :  { %v266_v62 = vpack.c.bf16 %v258_v58, %v257_v57 }
 0x113   :  { %v265_v63 = vpack.c.bf16 %v256_v61, %v255_v60 }
 0x115   :  { %715 = vmatprep.mubr.bf16.mxu1 %v265_v63 }
 0x116   :  { %716 = vmatmul.mubr.bf16.gmra.mrb[12].mxu1 %v266_v62 }
 0x1d1   :  { %v705_v0 = vpop.f32.mrb[0].mxu1 }
 0x1d2   :  { %v372_v2 = vpop.f32.mrb[1].mxu1  ;;  %v381_v4 = vadd.f32 %v705_v0, %v535_v1 }
 0x1d3   :  { %v706_v3 = vpop.f32.mrb[2].mxu1  ;;  %v373_v7 = vadd.f32 %v535_v1, %v372_v2 }
 0x1d4   :  { %v384_v5 = vadd.f32 %v706_v3, %v535_v1  ;;  %v375_v6 = vpop.f32.mrb[3].mxu1 }
 0x1d5   :  { %v376_v8 = vadd.f32 %v535_v1, %v375_v6 }
 0x1d6   :  { %v584_v9 = vpack.c.bf16 %v384_v5, %v381_v4 }
 0x1d7   :  { %v579_v10 = vpack.c.bf16 %v376_v8, %v373_v7 }
 0x1d8   :  { %616 = vst [vmem:[%s871_s4 + $0x8] sm:$0xff] %v584_v9  }
 0x1d9   :  { %580 = vst [vmem:[%s871_s4] sm:$0xff] %v579_v10   ;;  %v709_v11 = vpop.f32.mrb[4].mxu1 }
 0x1da   :  { %v388_v12 = vpop.f32.mrb[5].mxu1  ;;  %v397_v14 = vadd.f32 %v709_v11, %v535_v1 }
 0x1db   :  { %v710_v13 = vpop.f32.mrb[6].mxu1  ;;  %v389_v17 = vadd.f32 %v535_v1, %v388_v12 }
 0x1dc   :  { %v400_v15 = vadd.f32 %v710_v13, %v535_v1  ;;  %v391_v16 = vpop.f32.mrb[7].mxu1 }
 0x1dd   :  { %v392_v18 = vadd.f32 %v535_v1, %v391_v16 }
 0x1de   :  { %v594_v19 = vpack.c.bf16 %v400_v15, %v397_v14 }
 0x1df   :  { %v589_v20 = vpack.c.bf16 %v392_v18, %v389_v17 }
 0x1e0   :  { %618 = vst [vmem:[%s871_s4 + $0x18] sm:$0xff] %v594_v19  }
 0x1e1   :  { %617 = vst [vmem:[%s871_s4 + $0x10] sm:$0xff] %v589_v20   ;;  %v713_v21 = vpop.f32.mrb[8].mxu1 }
 0x1e2   :  { %v404_v22 = vpop.f32.mrb[9].mxu1  ;;  %v413_v24 = vadd.f32 %v713_v21, %v535_v1 }
 0x1e3   :  { %v714_v23 = vpop.f32.mrb[10].mxu1  ;;  %v405_v27 = vadd.f32 %v535_v1, %v404_v22 }
 0x1e4   :  { %v416_v25 = vadd.f32 %v714_v23, %v535_v1  ;;  %v407_v26 = vpop.f32.mrb[11].mxu1 }
 0x1e5   :  { %v408_v28 = vadd.f32 %v535_v1, %v407_v26 }
 0x1e6   :  { %v604_v29 = vpack.c.bf16 %v416_v25, %v413_v24 }
 0x1e7   :  { %v599_v30 = vpack.c.bf16 %v408_v28, %v405_v27 }
 0x1e8   :  { %620 = vst [vmem:[%s871_s4 + $0x28] sm:$0xff] %v604_v29  }
 0x1e9   :  { %619 = vst [vmem:[%s871_s4 + $0x20] sm:$0xff] %v599_v30   ;;  %v717_v31 = vpop.f32.mrb[12].mxu1 }
 0x1ea   :  { %v420_v32 = vpop.f32.mrb[13].mxu1  ;;  %v429_v34 = vadd.f32 %v717_v31, %v535_v1 }
 0x1eb   :  { %v718_v33 = vpop.f32.mrb[14].mxu1  ;;  %v421_v37 = vadd.f32 %v535_v1, %v420_v32 }
 0x1ec   :  { %v432_v35 = vadd.f32 %v718_v33, %v535_v1  ;;  %v423_v36 = vpop.f32.mrb[15].mxu1 }
 0x1ed   :  { %v424_v38 = vadd.f32 %v535_v1, %v423_v36 }
 0x1ee   :  { %v614_v39 = vpack.c.bf16 %v432_v35, %v429_v34 }
 0x1ef   :  { %v609_v40 = vpack.c.bf16 %v424_v38, %v421_v37 }
 0x1f0   :  { %622 = vst [vmem:[%s871_s4 + $0x38] sm:$0xff] %v614_v39  }
 0x1f1   :  { %621 = vst [vmem:[%s871_s4 + $0x30] sm:$0xff] %v609_v40  }

</bundles_post_ra>
